<compile_context>
chip_gen: v5e
topology: v5e:2x2
jax: 0.10.0
libtpu: 0.0.40
codegen_flags: <defaults>
</compile_context>

<pallas_src>
import functools

import jax
import jax.numpy as jnp
import numpy as np
from jax.experimental import pallas as pl
from jax.experimental.pallas import tpu as pltpu

_LANE = 128
_TARGET_BLOCK_BYTES = 1 << 20  # ~1 MiB of f32 per x block


def _ln_kernel(x_ref, w_ref, *rest, eps, with_bias):
    # x_ref: (Bt, C, TM) -- channels on sublanes, spatial positions on lanes
    # w_ref (and b_ref): (C, 1) f32, lane-broadcast per-channel params
    if with_bias:
        b_ref, o_ref = rest
    else:
        (o_ref,) = rest

    x = x_ref[...].astype(jnp.float32)              # (Bt, C, TM)
    # One-pass statistics: var = E[x^2] - E[x]^2 (f32 accumulation).
    m1 = jnp.mean(x, axis=1, keepdims=True)         # (Bt, 1, TM) sublane reduce
    m2 = jnp.mean(x * x, axis=1, keepdims=True)
    var = m2 - m1 * m1
    rstd = jax.lax.rsqrt(var + eps)                 # EUP
    w = w_ref[...]                                  # (C, 1), already f32
    if with_bias:
        y = (x - m1) * rstd * w + b_ref[...]
    else:
        # Restormer BiasFree semantics: variance is mean-centered, but x
        # itself is NOT centered (matches the PyTorch reference). Do not "fix".
        y = x * rstd * w
    o_ref[...] = y.astype(o_ref.dtype)


def _largest_divisor_leq(n, cap):
    cap = max(1, min(n, cap))
    for d in range(cap, 0, -1):
        if n % d == 0:
            return d
    return 1


def _pick_tiles(B, C, hw, target_bytes=_TARGET_BLOCK_BYTES):
    """Choose (Bt, TM): batch-per-block and lane-dense spatial tile."""
    bytes_per_pos = C * 4  # f32 accounting (kernel upcasts to f32)
    tm_cap = max(_LANE, (target_bytes // bytes_per_pos) // _LANE * _LANE)

    if hw > tm_cap:
        # Prefer a 128-multiple divisor of hw near the cap (avoids a masked
        # boundary store); otherwise use the cap with a cdiv grid.
        tm = tm_cap
        lo = max(_LANE, tm_cap // 2)
        for cand in range(tm_cap, lo - 1, -_LANE):
            if hw % cand == 0:
                tm = cand
                break
        return 1, tm

    # Whole spatial extent fits in one lane-dense tile; batch images per block.
    tm = hw
    per_img = bytes_per_pos * hw
    bt = _largest_divisor_leq(B, max(1, target_bytes // max(per_img, 1)))
    # Keep >= 2 grid steps when possible (both v7x TCs + pipelining get work).
    if B >= 2 and B // bt < 2:
        bt = _largest_divisor_leq(B, max(1, B // 2))
    return bt, tm


def layer_norm_nchw(x, weight, bias=None, *, eps=1e-5,
                    layer_norm_type="WithBias"):
    """LayerNorm over the channel dim at each spatial position.

    x: (B, C, H, W); weight: (C,); bias: (C,) or None.
    Equivalent to to_4d(body(to_3d(x)), h, w) from the PyTorch module.
    """
    B, C, H, W = x.shape
    hw = H * W
    with_bias = layer_norm_type != "BiasFree"

    # Free reshape (trailing dims merge, no data movement / transpose).
    x2 = x.reshape(B, C, hw)
    w2 = weight.reshape(C, 1).astype(jnp.float32)   # params kept in f32

    Bt, TM = _pick_tiles(B, C, hw)
    grid = (B // Bt, pl.cdiv(hw, TM))

    x_spec = pl.BlockSpec((Bt, C, TM), lambda b, t: (b, 0, t))
    p_spec = pl.BlockSpec((C, 1), lambda b, t: (0, 0))

    operands = [x2, w2]
    in_specs = [x_spec, p_spec]
    if with_bias:
        b_src = bias if bias is not None else jnp.zeros((C,), jnp.float32)
        operands.append(b_src.reshape(C, 1).astype(jnp.float32))
        in_specs.append(p_spec)

    kernel = functools.partial(_ln_kernel, eps=eps, with_bias=with_bias)

    out2 = pl.pallas_call(
        kernel,
        out_shape=jax.ShapeDtypeStruct((B, C, hw), x.dtype),
        grid_spec=pltpu.PrefetchScalarGridSpec(
            num_scalar_prefetch=0,
            grid=grid,
            in_specs=in_specs,
            out_specs=x_spec,
        ),
        compiler_params=pltpu.CompilerParams(
            dimension_semantics=("parallel", "parallel")),
    )(*operands)

    return out2.reshape(B, C, H, W)


def _ref_layer_norm(x, weight, bias, *, eps=1e-5, with_bias=True):
    """Pure-JAX reference matching the PyTorch module exactly."""
    B, C, H, W = x.shape
    x3 = jnp.transpose(x, (0, 2, 3, 1)).reshape(B, H * W, C).astype(jnp.float32)
    mu = jnp.mean(x3, axis=-1, keepdims=True)
    var = jnp.mean((x3 - mu) ** 2, axis=-1, keepdims=True)  # unbiased=False
    if with_bias:
        y = (x3 - mu) / jnp.sqrt(var + eps) * weight + bias
    else:
        y = x3 / jnp.sqrt(var + eps) * weight
    y = y.reshape(B, H, W, C).transpose(0, 3, 1, 2)
    return y.astype(x.dtype)


if __name__ == "__main__":
    key = jax.random.PRNGKey(0)
    k_x, k_w, k_b, k_x2 = jax.random.split(key, 4)

    # LayerNorm(dim=32) applied to a (B=2, C=32, H=16, W=16) feature map.
    B, C, H, W = 2, 32, 16, 16
    x = jax.random.normal(k_x, (B, C, H, W), dtype=jnp.float32)
    weight = 1.0 + 0.1 * jax.random.normal(k_w, (C,), dtype=jnp.float32)
    bias = 0.1 * jax.random.normal(k_b, (C,), dtype=jnp.float32)

    # WithBias variant (default branch of the module)
    out_wb = jax.block_until_ready(
        layer_norm_nchw(x, weight, bias, layer_norm_type="WithBias"))
    ref_wb = _ref_layer_norm(x, weight, bias, with_bias=True)
    assert out_wb.shape == (B, C, H, W)
    np.testing.assert_allclose(np.asarray(out_wb), np.asarray(ref_wb),
                               rtol=2e-5, atol=2e-5)

    # BiasFree variant (no bias operand DMA'd at all)
    out_bf = jax.block_until_ready(
        layer_norm_nchw(x, weight, None, layer_norm_type="BiasFree"))
    ref_bf = _ref_layer_norm(x, weight, None, with_bias=False)
    np.testing.assert_allclose(np.asarray(out_bf), np.asarray(ref_bf),
                               rtol=2e-5, atol=2e-5)

    # Larger spatial extent that exercises the spatial-tiling path (TM < H*W).
    xb = jax.random.normal(k_x2, (1, C, 128, 128), dtype=jnp.float32)
    out_big = jax.block_until_ready(
        layer_norm_nchw(xb, weight, bias, layer_norm_type="WithBias"))
    ref_big = _ref_layer_norm(xb, weight, bias, with_bias=True)
    np.testing.assert_allclose(np.asarray(out_big), np.asarray(ref_big),
                               rtol=2e-5, atol=2e-5)

    print("KERNEL_OK")
</pallas_src>

<mosaic_0001>
module attributes {stable_mosaic.version = 11 : i64} {
  func.func @_ln_kernel(%arg0: i32, %arg1: i32, %arg2: memref<1x32x256xf32, #tpu.memory_space<vmem>>, %arg3: memref<32x1xf32, #tpu.memory_space<vmem>>, %arg4: memref<32x1xf32, #tpu.memory_space<vmem>>, %arg5: memref<1x32x256xf32, #tpu.memory_space<vmem>>) attributes {dimension_semantics = [#tpu.dimension_semantics<parallel>, #tpu.dimension_semantics<parallel>], iteration_bounds = array<i64: 2, 1>, scalar_prefetch = 0 : i64, scratch_operands = 0 : i64, tpu.core_type = #tpu.core_type<tc>, window_params = [{transform_indices = @transform_0, window_bounds = array<i64: 1, 32, 256>}, {pipeline_mode = #tpu.pipeline_mode<synchronous>, transform_indices = @transform_1, window_bounds = array<i64: 32, 1>}, {pipeline_mode = #tpu.pipeline_mode<synchronous>, transform_indices = @transform_2, window_bounds = array<i64: 32, 1>}, {transform_indices = @transform_3, window_bounds = array<i64: 1, 32, 256>}]} {
    %c0 = arith.constant 0 : index
    %c0_0 = arith.constant 0 : index
    %c0_1 = arith.constant 0 : index
    %0 = vector.load %arg2[%c0, %c0_0, %c0_1] : memref<1x32x256xf32, #tpu.memory_space<vmem>>, vector<1x32x256xf32>
    %cst = arith.constant dense<0.000000e+00> : vector<1x256xf32>
    %1 = vector.multi_reduction <add>, %0, %cst [1] : vector<1x32x256xf32> to vector<1x256xf32>
    %2 = vector.shape_cast %1 : vector<1x256xf32> to vector<1x1x256xf32>
    %cst_2 = arith.constant 3.200000e+01 : f32
    %3 = vector.broadcast %cst_2 : f32 to vector<1x1x256xf32>
    %4 = arith.divf %2, %3 : vector<1x1x256xf32>
    %5 = arith.mulf %0, %0 : vector<1x32x256xf32>
    %cst_3 = arith.constant dense<0.000000e+00> : vector<1x256xf32>
    %6 = vector.multi_reduction <add>, %5, %cst_3 [1] : vector<1x32x256xf32> to vector<1x256xf32>
    %7 = vector.shape_cast %6 : vector<1x256xf32> to vector<1x1x256xf32>
    %cst_4 = arith.constant 3.200000e+01 : f32
    %8 = vector.broadcast %cst_4 : f32 to vector<1x1x256xf32>
    %9 = arith.divf %7, %8 : vector<1x1x256xf32>
    %10 = arith.mulf %4, %4 : vector<1x1x256xf32>
    %11 = arith.subf %9, %10 : vector<1x1x256xf32>
    %cst_5 = arith.constant 9.99999974E-6 : f32
    %12 = vector.broadcast %cst_5 : f32 to vector<1x1x256xf32>
    %13 = arith.addf %11, %12 : vector<1x1x256xf32>
    %14 = math.rsqrt %13 : vector<1x1x256xf32>
    %c0_6 = arith.constant 0 : index
    %c0_7 = arith.constant 0 : index
    %15 = vector.load %arg3[%c0_6, %c0_7] : memref<32x1xf32, #tpu.memory_space<vmem>>, vector<32x1xf32>
    %16 = vector.broadcast %4 : vector<1x1x256xf32> to vector<1x32x256xf32>
    %17 = arith.subf %0, %16 : vector<1x32x256xf32>
    %18 = vector.broadcast %14 : vector<1x1x256xf32> to vector<1x32x256xf32>
    %19 = arith.mulf %17, %18 : vector<1x32x256xf32>
    %20 = vector.shape_cast %15 : vector<32x1xf32> to vector<1x32x1xf32>
    %21 = vector.broadcast %20 : vector<1x32x1xf32> to vector<1x32x256xf32>
    %22 = arith.mulf %19, %21 : vector<1x32x256xf32>
    %c0_8 = arith.constant 0 : index
    %c0_9 = arith.constant 0 : index
    %23 = vector.load %arg4[%c0_8, %c0_9] : memref<32x1xf32, #tpu.memory_space<vmem>>, vector<32x1xf32>
    %24 = vector.shape_cast %23 : vector<32x1xf32> to vector<1x32x1xf32>
    %25 = vector.broadcast %24 : vector<1x32x1xf32> to vector<1x32x256xf32>
    %26 = arith.addf %22, %25 : vector<1x32x256xf32>
    %c0_10 = arith.constant 0 : index
    %c0_11 = arith.constant 0 : index
    %c0_12 = arith.constant 0 : index
    %27 = vector.load %arg5[%c0_10, %c0_11, %c0_12] : memref<1x32x256xf32, #tpu.memory_space<vmem>>, vector<1x32x256xf32>
    tpu.vector_store %arg5[%c0_10, %c0_11, %c0_12], %26 {strides = array<i32>} : memref<1x32x256xf32, #tpu.memory_space<vmem>>, vector<1x32x256xf32>,
    return
  }
  func.func @transform_0(%arg0: i32, %arg1: i32) -> (i32, i32, i32) {
    %c0_i32 = arith.constant 0 : i32
    %c0_i32_0 = arith.constant 0 : i32
    return %arg0, %c0_i32, %arg1 : i32, i32, i32
  }
  func.func @transform_1(%arg0: i32, %arg1: i32) -> (i32, i32) {
    %c0_i32 = arith.constant 0 : i32
    %c0_i32_0 = arith.constant 0 : i32
    %c0_i32_1 = arith.constant 0 : i32
    return %c0_i32, %c0_i32_0 : i32, i32
  }
  func.func @transform_2(%arg0: i32, %arg1: i32) -> (i32, i32) {
    %c0_i32 = arith.constant 0 : i32
    %c0_i32_0 = arith.constant 0 : i32
    %c0_i32_1 = arith.constant 0 : i32
    return %c0_i32, %c0_i32_0 : i32, i32
  }
  func.func @transform_3(%arg0: i32, %arg1: i32) -> (i32, i32, i32) {
    %c0_i32 = arith.constant 0 : i32
    %c0_i32_0 = arith.constant 0 : i32
    return %arg0, %c0_i32, %arg1 : i32, i32, i32
  }
}

</mosaic_0001>

<bundles_post_ra>
// kernel: tpu_custom_call.1
= control target key start
LH: loop header
LB: loop body
LE: loop exit
PB: predicated region body
PF: predicated region fallthrough
CT: control target
= control target key end

     0   :  { %8 = vsyncpa [#allocation3], 0  ;;  %s960_s0 = inlined_call_operand.hbm [shape: f32[2,32,256], index: 0, kind: input, shape index: {}]   ;;  %s961_s1 = inlined_call_operand.vmem [shape: f32[32,1], index: 1, kind: input, shape index: {}]   ;;  %s962_s2 = inlined_call_operand.vmem [shape: f32[32,1], index: 2, kind: input, shape index: {}]   ;;  %s963_s3 = inlined_call_operand.hbm [shape: f32[2,32,256], index: 3, kind: output, shape index: {}]  }
   0x1   :  { %10 = vsyncpa [#allocation3 + $0x1], 0 }
   0x2   :  { %11 = vsyncpa [#allocation4], 0 }
   0x3   :  { %13 = vsyncpa [#allocation4 + $0x1], 0  ;;  %s727_s12 = smov 0   ;;  %s729_s13 = smov 0  }
   0x4   :  { %s731_s14 = smov 0   ;;  %s733_s15 = smov 0  }
   0x5   :  { %s735_s16 = smov 0   ;;  %s737_s17 = smov 0  }
   0x6 LB: > { %s493_s18 = sadd.s32 4294967295, %s699_s17   ;;  %s494_s19 = sadd.s32 4294967294, %s699_s17   ;;  %s699_s17 = sphi %s737_s17, %s19_s17   ;;  %s695_s16 = sphi %s735_s16, %s972_s16   ;;  %s691_s15 = sphi %s733_s15, %s971_s15   ;;  %s687_s14 = sphi %s731_s14, %s970_s14   ;;  %s683_s13 = sphi %s729_s13, %s969_s13   ;;  %s679_s12 = sphi %s727_s12, %s968_s12  }
   0x7   : > { %s31_s20 = sadd.s32 1, %s695_s16  ;;  %s40_s21 = sadd.s32 1, %s687_s14 }
   0x8   : > { %p33_p0 = scmp.ge.s32.totalorder %s31_s20, 2  ;;  %p47_p1 = scmp.ne.s32.totalorder %s687_s14, %s683_s13 }
   0x9   : > { %p48_p2 = scmp.eq.s32.totalorder %s699_s17, 0  ;;  %p53_p3 = scmp.ne.s32.totalorder %s683_s13, %s679_s12 }
   0xa   : > { %s974_s20 = smov (%p33_p0, %s31_s20), 0  ;;  %p54_p5 = scmp.eq.s32.totalorder %s493_s18, 0 }
   0xb   : > { %p768_p4 = por %p48_p2, %p47_p1  ;;  %s35_s23 = ssub.s32 %s695_s16, %s974_s20 }
   0xc   : > { %p121_p6 = scmp.eq.s32.totalorder %s493_s18, 1  ;;  %p38_p7 = scmp.eq.s32.totalorder %s35_s23, 0 }
   0xd   : > { %p774_p8 = por %p54_p5, %p53_p3  ;;  %p127_p10 = scmp.eq.s32.totalorder %s494_s19, 1 }
   0xe   : > { %p778_p9 = por %p121_p6, %p47_p1  ;;  %p496_p12 = scmp.ge.s32.totalorder %s699_s17, 2 }
   0xf   : > { %s783_s26 = scalar_select %p38_p7, %s687_s14, %s40_s21  }
  0x10   : > { %p785_p11 = por %p127_p10, %p53_p3  ;;  %p522_p13 = scmp.lt.s32.totalorder %s699_s17, 2 }
  0x11   : > { %s153_s28 = sand.u32 1, %s687_s14   ;;  %s508_s30 = sshll.u32 %s695_s16, 6 }
  0x12   : > { %s497_s29 = sshll.u32 %s153_s28, 6  ;;  %s164_s6 = scalar_lea.hbm %s960_s0, %s508_s30 }
  0x13   : > { %s157_s7 = scalar_lea.vmem [#allocation2], %s497_s29  ;;  %s165_s9 = sshll.u32 %s164_s6, 4  ;;  %s166_s9 = int_to_ptr.hbm [resolvable:$true] %s165_s9 }
  0x14   : > { %s167_s8 = sshll.u32 %s157_s7, 4  ;;  %p515_p0 = pnand %p522_p13, %p768_p4  ;;  %s168_s8 = int_to_ptr.vmem [resolvable:$true] %s167_s8 }
  0x15   : > { %p500_p1 = scmp.ge.s32.totalorder %s699_s17, 1  ;;  %s154_s10 = scalar_lea.sflag [#allocation3], %s153_s28 }
  0x16   : > { %s701_s11 = smov 256   ;;  %s702_s18 = smov 16  }
  0x17   : > { %517 = dma.hbm_to_vmem [thread:$0]  (!%p515_p0), %s166_s9, 1024, %s168_s8, %s154_s10, %s701_s11, %s701_s11, %s702_s18  }
  0x18   : > { %p175_p2 = scmp.lt.s32.totalorder %s699_s17, 3 }
  0x1a   : > { %p176_p3 = pnand %p500_p1, %p175_p2 }
  0x1b   : > { %s801_s19 = sand.u32 (!%p176_p3), 1, %s683_s13  }
  0x1c   : > { %179 = sbr.rel (%p176_p3) target bundleno = 176 (0xb0), region = 32  ;;  %s501_s21 = sshll.u32 (!%p176_p3), %s801_s19, 6 }
  0x1d   : > { %s182_s23 = scalar_lea.sflag (!%p176_p3), [#allocation3], %s801_s19  ;;  %s807_s22 = scalar_lea.vmem (!%p176_p3), [#allocation2], %s501_s21 }
  0x21   : > { %670 = dma.done.wait (%p774_p8), %s182_s23, 1024  }
  0x22   : > { %672 = vsyncadd (%p774_p8), %s182_s23, 4294966272  ;;  %v703_v0 = vmov 0   ;;  %v302_v1 = vld [vmem:[%s961_s1 + $0x10] sm:$0xff]  ;;  %v300_v2 = vld [vmem:[%s961_s1] sm:$0xff]  ;;  %v704_v21 = vmov 32.0   ;;  %s389_s6 = scalar_lea.sflag [#allocation4], %s801_s19 }
  0x23   : > { %579 = vset.pattern.permute.xlu1 %v703_v0  ;;  %578 = vset.pattern.permute.xlu0 %v703_v0  ;;  %v348_v3 = vld [vmem:[%s962_s2] sm:$0xff]  ;;  %v303_v4 = vld [vmem:[%s961_s1 + $0x18] sm:$0xff]  ;;  %v301_v5 = vld [vmem:[%s961_s1 + $0x8] sm:$0xff]  ;;  %581 = vrcp.f32 %v704_v21  ;;  %s637_s11 = scalar_lea.hbm %s963_s3, 128 }
  0x24   : > { %580 = vset.pattern.permute.xlu2 %v703_v0  ;;  %332 = vperm.xlu1 %579, %v302_v1   ;;  %v349_v6 = vld [vmem:[%s962_s2 + $0x8] sm:$0xff]  ;;  %v351_v7 = vld [vmem:[%s962_s2 + $0x18] sm:$0xff]  ;;  %v350_v8 = vld [vmem:[%s962_s2 + $0x10] sm:$0xff] }
  0x25   : > { %322 = vperm.xlu0 %578, %v300_v2   ;;  %354 = vperm.xlu2 %580, %v348_v3   ;;  %v838_v9 = vld [vmem:[%s807_s22] sm:$0xff]  ;;  %v841_v10 = vld [vmem:[%s807_s22 + $0x8] sm:$0xff]  ;;  %v844_v11 = vld [vmem:[%s807_s22 + $0x10] sm:$0xff] }
  0x26   : > { %v847_v12 = vld [vmem:[%s807_s22 + $0x18] sm:$0xff]  ;;  %v219_v13 = vadd.f32 %v844_v11, %v838_v9  ;;  %v246_v14 = vmul.f32 %v838_v9, %v838_v9  ;;  %v247_v15 = vmul.f32 %v841_v10, %v841_v10  ;;  %v248_v16 = vmul.f32 %v844_v11, %v844_v11  ;;  %v858_v17 = vld [vmem:[%s807_s22 + $0x20] sm:$0xff]  ;;  %v861_v18 = vld [vmem:[%s807_s22 + $0x28] sm:$0xff] }
  0x27   : > { %v228_v19 = vadd.f32 %v847_v12, %v841_v10  ;;  %v249_v20 = vmul.f32 %v847_v12, %v847_v12  ;;  %v250_v23 = vmul.f32 %v858_v17, %v858_v17  ;;  %v251_v24 = vmul.f32 %v861_v18, %v861_v18  ;;  %v873_v25 = vld [vmem:[%s807_s22 + $0x30] sm:$0xff]  ;;  %v876_v26 = vld [vmem:[%s807_s22 + $0x38] sm:$0xff]  ;;  %s903_s22 = scalar_lea.vmem [#allocation5], %s501_s21  ;;  %s509_s21 = sshll.u32 %s691_s15, 6 }
  0x28   : > { %v220_v22 = vadd.f32 %v219_v13, %v858_v17  ;;  %v254_v28 = vadd.f32 %v248_v16, %v246_v14  ;;  %v252_v31 = vmul.f32 %v873_v25, %v873_v25  ;;  %v253_v32 = vmul.f32 %v876_v26, %v876_v26  ;;  %s402_s5 = scalar_lea.hbm %s963_s3, %s509_s21  ;;  %s403_s15 = sshll.u32 %s903_s22, 4  ;;  %s404_s15 = int_to_ptr.vmem [resolvable:$true] %s403_s15 }
  0x29   : > { %v229_v27 = vadd.f32 %v228_v19, %v861_v18  ;;  %v263_v29 = vadd.f32 %v249_v20, %v247_v15  ;;  %v582_v40 = vpop.eup %581  ;;  %s405_s24 = sshll.u32 %s402_s5, 4  ;;  %s406_s24 = int_to_ptr.hbm [resolvable:$true] %s405_s24 }
  0x2a   : > { %v221_v30 = vadd.f32 %v220_v22, %v873_v25  ;;  %v255_v34 = vadd.f32 %v254_v28, %v250_v23  ;;  %v238_v42 = vmul.f32 32.0, %v582_v40  ;;  %vm242_vm0 = vweird.f32 %v582_v40  ;;  %s631_s7 = sshra.s32 %s406_s24, 4  ;;  %s632_s7 = int_to_ptr.hbm [resolvable:$true] %s631_s7 }
  0x2b   : > { %v230_v33 = vadd.f32 %v229_v27, %v876_v26  ;;  %v264_v35 = vadd.f32 %v263_v29, %v251_v24  ;;  %s633_s8 = scalar_lea.hbm %s632_s7, 64  ;;  %p638_p7 = scmp.lt.s32.totalorder %s632_s7, %s963_s3 }
  0x2c   : > { %337 = vperm.xlu1 %579, %v303_v4   ;;  %v222_v36 = vrot.slane %v221_v30, 4  ;;  %v256_v38 = vadd.f32 %v255_v34, %v252_v31  ;;  %v239_v47 = vsub.f32 1.0, %v238_v42  ;;  %p634_p4 = scmp.ne.s32.totalorder %s632_s7, %s633_s8  ;;  %p639_p8 = scmp.lt.s32.totalorder %s637_s11, %s633_s8 }
  0x2d   : > { %327 = vperm.xlu0 %578, %v301_v5   ;;  %359 = vperm.xlu2 %580, %v349_v6   ;;  %v231_v37 = vrot.slane %v230_v33, 4  ;;  %v265_v39 = vadd.f32 %v264_v35, %v253_v32 }
  0x2e   : > { %v223_v41 = vadd.f32 %v222_v36, %v221_v30  ;;  %v257_v44 = vrot.slane %v256_v38, 4  ;;  %v240_v53 = vmul.f32 %v582_v40, %v239_v47  ;;  %p635_p5 = pnand %p634_p4, %p778_p9  ;;  %p640_p10 = por %p639_p8, %p638_p7 }
  0x2f   : > { %v232_v43 = vadd.f32 %v231_v37, %v230_v33  ;;  %v266_v45 = vrot.slane %v265_v39, 4 }
  0x30   : > { %v224_v46 = vrot.slane %v223_v41, 2  ;;  %v258_v49 = vadd.f32 %v257_v44, %v256_v38  ;;  %v241_v58 = vadd.f32 %v582_v40, %v240_v53  ;;  %p636_p6 = pneg %p635_p5 }
  0x31   : > { %v233_v48 = vrot.slane %v232_v43, 2  ;;  %v267_v50 = vadd.f32 %v266_v45, %v265_v39 }
  0x32   : > { %v225_v51 = vadd.f32 %v224_v46, %v223_v41  ;;  %v259_v52 = vrot.slane %v258_v49, 2  ;;  %v243_v63 = vsel %vm242_vm0, %v582_v40, %v241_v58  ;;  %p641_p13 = pnand %p640_p10, %p636_p6 }
  0x33   : > { %v234_v54 = vadd.f32 %v233_v48, %v232_v43  ;;  %v268_v55 = vrot.slane %v267_v50, 2 }
  0x34   : > { %369 = vperm.xlu1 %579, %v351_v7   ;;  %v226_v56 = vrot.slane %v225_v51, 1  ;;  %v260_v57 = vadd.f32 %v259_v52, %v258_v49 }
  0x35   : > { %364 = vperm.xlu0 %578, %v350_v8   ;;  %v235_v59 = vrot.slane %v234_v54, 1  ;;  %v269_v60 = vadd.f32 %v268_v55, %v267_v50 }
  0x36   : > { %v227_v61 = vadd.f32 %v226_v56, %v225_v51  ;;  %v261_v62 = vrot.slane %v260_v57, 1 }
  0x37   : > { %v236_v0 = vadd.f32 %v235_v59, %v234_v54  ;;  %v270_v1 = vrot.slane %v269_v60, 1 }
  0x38   : > { %v885_v2 = vmul.f32 %v243_v63, %v227_v61  ;;  %v262_v3 = vadd.f32 %v261_v62, %v260_v57 }
  0x39   : > { %v887_v4 = vmul.f32 %v243_v63, %v236_v0  ;;  %v271_v5 = vadd.f32 %v270_v1, %v269_v60 }
  0x3a   : > { %v272_v6 = vmul.f32 %v262_v3, %v243_v63  ;;  %v274_v7 = vmul.f32 %v885_v2, %v885_v2  ;;  %v304_v34 = vsub.f32 %v838_v9, %v885_v2  ;;  %v306_v45 = vsub.f32 %v844_v11, %v885_v2 }
  0x3b   : > { %v273_v8 = vmul.f32 %v271_v5, %v243_v63  ;;  %v275_v13 = vmul.f32 %v887_v4, %v887_v4  ;;  %v305_v35 = vsub.f32 %v841_v10, %v887_v4  ;;  %v307_v46 = vsub.f32 %v847_v12, %v887_v4 }
  0x3c   : > { %v276_v14 = vsub.f32 %v272_v6, %v274_v7  ;;  %v308_v49 = vsub.f32 %v858_v17, %v885_v2  ;;  %v310_v11 = vsub.f32 %v873_v25, %v885_v2  ;;  %v311_v12 = vsub.f32 %v876_v26, %v887_v4 }
  0x3d   : > { %v277_v15 = vsub.f32 %v273_v8, %v275_v13  ;;  %v309_v50 = vsub.f32 %v861_v18, %v887_v4 }
  0x3e   : > { %v278_v16 = vadd.f32 1e-05, %v276_v14 }
  0x3f   : > { %v279_v19 = vadd.f32 1e-05, %v277_v15 }
  0x40   : > { %583 = vrsqrt.f32 %v278_v16  ;;  %vm286_vm1 = vweird.f32 %v278_v16 }
  0x41   : > { %585 = vrsqrt.f32 %v279_v19  ;;  %vm296_vm3 = vweird.f32 %v279_v19 }
  0x46   : > { %v584_v20 = vpop.eup %583 }
  0x47   : > { %v586_v21 = vpop.eup %585  ;;  %v281_v22 = vmul.f32 %v584_v20, %v278_v16  ;;  %vm287_vm2 = vweird.f32 %v584_v20 }
  0x48   : > { %v291_v23 = vmul.f32 %v586_v21, %v279_v19  ;;  %vm297_vm4 = vweird.f32 %v586_v21  ;;  %vm288_vm5 = vmor %vm286_vm1, %vm287_vm2 }
  0x49   : > { %v282_v24 = vmul.f32 %v584_v20, %v281_v22  ;;  %vm298_vm6 = vmor %vm296_vm3, %vm297_vm4 }
  0x4a   : > { %v292_v27 = vmul.f32 %v586_v21, %v291_v23 }
  0x4b   : > { %v283_v28 = vmul.f32 0.5, %v282_v24 }
  0x4c   : > { %v293_v29 = vmul.f32 0.5, %v292_v27 }
  0x4d   : > { %v284_v30 = vsub.f32 1.5, %v283_v28 }
  0x4e   : > { %v294_v31 = vsub.f32 1.5, %v293_v29 }
  0x4f   : > { %v285_v32 = vmul.f32 %v584_v20, %v284_v30 }
  0x50   : > { %v295_v33 = vmul.f32 %v586_v21, %v294_v31 }
  0x51   : > { %v289_v36 = vsel %vm288_vm5, %v584_v20, %v285_v32 }
  0x52   : > { %v299_v37 = vsel %vm298_vm6, %v586_v21, %v295_v33  ;;  %v312_v38 = vmul.f32 %v304_v34, %v289_v36  ;;  %v314_v10 = vmul.f32 %v306_v45, %v289_v36  ;;  %v316_v55 = vmul.f32 %v308_v49, %v289_v36 }
  0x53   : > { %v313_v39 = vmul.f32 %v305_v35, %v299_v37  ;;  %v315_v48 = vmul.f32 %v307_v46, %v299_v37  ;;  %v318_v17 = vmul.f32 %v310_v11, %v289_v36  ;;  %v319_v57 = vmul.f32 %v311_v12, %v299_v37 }
  0x54   : > { %v317_v25 = vmul.f32 %v309_v50, %v299_v37 }
  0x7f   : > { %v355_v40 = vpop.permute.xlu2 %354 }
  0x87   : > { %v360_v56 = vpop.permute.xlu2 %359 }
  0x96   : > { %v333_v41 = vpop.permute.xlu1 %332 }
  0x97   : > { %v323_v42 = vpop.permute.xlu0 %322  ;;  %v344_v18 = vmul.f32 %v333_v41, %v316_v55  ;;  %v345_v61 = vmul.f32 %v333_v41, %v317_v25 }
  0x98   : > { %v340_v43 = vmul.f32 %v323_v42, %v312_v38  ;;  %v341_v44 = vmul.f32 %v323_v42, %v313_v39 }
  0x9a   : > { %v372_v47 = vadd.f32 %v355_v40, %v340_v43  ;;  %v373_v9 = vadd.f32 %v355_v40, %v341_v44 }
  0x9c   : > { %380 = vst [vmem:[%s903_s22] sm:$0xff] %v372_v47 }
  0x9d   : > { %381 = vst [vmem:[%s903_s22 + $0x8] sm:$0xff] %v373_v9 }
  0x9e   : > { %v338_v51 = vpop.permute.xlu1 %337 }
  0x9f   : > { %v328_v52 = vpop.permute.xlu0 %327  ;;  %v346_v26 = vmul.f32 %v338_v51, %v318_v17  ;;  %v347_v60 = vmul.f32 %v338_v51, %v319_v57 }
  0xa0   : > { %v342_v53 = vmul.f32 %v328_v52, %v314_v10  ;;  %v343_v54 = vmul.f32 %v328_v52, %v315_v48 }
  0xa2   : > { %v374_v58 = vadd.f32 %v360_v56, %v342_v53  ;;  %v375_v59 = vadd.f32 %v360_v56, %v343_v54 }
  0xa4   : > { %382 = vst [vmem:[%s903_s22 + $0x10] sm:$0xff] %v374_v58 }
  0xa5   : > { %383 = vst [vmem:[%s903_s22 + $0x18] sm:$0xff] %v375_v59 }
  0xa6   : > { %v370_v62 = vpop.permute.xlu1 %369 }
  0xa7   : > { %v365_v63 = vpop.permute.xlu0 %364  ;;  %v378_v0 = vadd.f32 %v370_v62, %v346_v26  ;;  %v379_v1 = vadd.f32 %v370_v62, %v347_v60 }
  0xa8   : > { %v376_v2 = vadd.f32 %v365_v63, %v344_v18  ;;  %v377_v3 = vadd.f32 %v365_v63, %v345_v61 }
  0xa9   : > { %386 = vst [vmem:[%s903_s22 + $0x30] sm:$0xff] %v378_v0 }
  0xaa   : > { %387 = vst [vmem:[%s903_s22 + $0x38] sm:$0xff] %v379_v1 }
  0xab   : > { %384 = vst [vmem:[%s903_s22 + $0x20] sm:$0xff] %v376_v2 }
  0xac   : > { %385 = vst [vmem:[%s903_s22 + $0x28] sm:$0xff] %v377_v3 }
  0xad   : > { %644 = shalt.err (!%p641_p13)
}
  0xae   : > { %s705_s19 = smov 256   ;;  %s706_s28 = smov 16  }
  0xaf   : > { %512 = dma.vmem_to_hbm [thread:$0]  (%p778_p9), %s404_s15, 1024, %s406_s24, %s389_s6, %s705_s19, %s705_s19, %s706_s28  }
  0xb0 PF: > { %s420_s29 = sand.u32 1, %s679_s12   ;;  %p519_p0 = pnand %p496_p12, %p785_p11 }
  0xb1   : > { %s421_s22 = scalar_lea.sflag [#allocation4], %s420_s29 }
  0xb2   : > { %p520_p1 = pneg %p519_p0 }
  0xb4   : > { %674 = dma.done.wait (%p520_p1), %s421_s22, 1024  }
  0xb5   : > { %676 = vsyncadd (%p520_p1), %s421_s22, 4294966272  ;;  %s19_s17 = sadd.s32 1, %s699_s17   ;;  %s968_s12 = smov %s683_s13 }
  0xb6   : > { %p16_p2 = scmp.ge.s32.totalorder %s19_s17, 4   ;;  %s969_s13 = smov %s687_s14 }
  0xb7   : > { %s970_s14 = smov %s783_s26  ;;  %s971_s15 = smov %s695_s16 }
  0xb8   : > { %s972_s16 = smov %s974_s20  ;;  %18 = sbr.rel (!%p16_p2) target bundleno = 6 (0x6), region = 77 }
  0xbd   :  { %427 = vsyncpa [#allocation3], 1 }
  0xbe   :  { %429 = vsyncpa [#allocation3 + $0x1], 1 }
  0xbf   :  { %430 = vsyncpa [#allocation4], 1 }
  0xc0   :  { %432 = vsyncpa [#allocation4 + $0x1], 1 }

</bundles_post_ra>
